<compile_context>
chip_gen: v6e
topology: v6e:2x2x1
jax: 0.10.0
libtpu: 0.0.40
codegen_flags: <defaults>
</compile_context>

<pallas_src>
import math
from functools import partial

import jax
import jax.numpy as jnp
from jax import lax
from jax.experimental import pallas as pl
from jax.experimental.pallas import tpu as pltpu

BN_EPS = 1e-5
ACT_DTYPE = jnp.bfloat16


# ----------------------------------------------------------------------------
# Pallas matmul kernel:  out = [relu]( (A @ W) [* gate] + bias [+ residual] )
# ----------------------------------------------------------------------------

def _round_up(x, m):
    return ((x + m - 1) // m) * m


def _pick_tile(padded, prefer=512):
    """Largest tile (<= prefer) that divides the padded dim (always mult of 128)."""
    if padded <= prefer:
        return padded
    for t in (prefer, 256, 128):
        if padded % t == 0:
            return t
    return 128


def _make_mm_kernel(relu, has_gate, has_res):
    def kernel(*refs):
        a_ref, w_ref, b_ref = refs[0], refs[1], refs[2]
        idx = 3
        gate_ref = None
        res_ref = None
        if has_gate:
            gate_ref = refs[idx]
            idx += 1
        if has_res:
            res_ref = refs[idx]
            idx += 1
        o_ref, acc_ref = refs[idx], refs[idx + 1]

        k = pl.program_id(2)

        @pl.when(k == 0)
        def _():
            acc_ref[...] = jnp.zeros_like(acc_ref)

        acc_ref[...] += jnp.dot(a_ref[...], w_ref[...],
                                preferred_element_type=jnp.float32)

        @pl.when(k == pl.num_programs(2) - 1)
        def _():
            y = acc_ref[...]
            if has_gate:                       # per-row reverse-attention gate
                y = y * gate_ref[...]
            y = y + b_ref[...]
            if has_res:                        # fused residual add
                y = y + res_ref[...].astype(jnp.float32)
            if relu:
                y = jnp.maximum(y, 0.0)
            o_ref[...] = y.astype(o_ref.dtype)

    return kernel


@partial(jax.jit, static_argnames=("n_out", "relu", "out_dtype"))
def _matmul_affine(a, w_p, b_p, gate, residual, *, n_out, relu, out_dtype):
    """a:[M,K]; w_p:[Kp,Np] bf16 pre-padded (BN scale folded); b_p:[1,Np] f32.
    Optional gate:[M,1] (post-matmul per-row multiply), residual:[M,n_out]
    (added before ReLU).  Returns [M, n_out] in out_dtype."""
    M, K = a.shape
    Kp, Np = w_p.shape

    if M <= 256:
        Mp = _round_up(max(M, 16), 16)
        tm = Mp
    else:
        tm = 512 if M >= 512 else 256
        Mp = _round_up(M, tm)
    tk = _pick_tile(Kp)
    tn = _pick_tile(Np)

    a_p = jnp.pad(a.astype(jnp.bfloat16), ((0, Mp - M), (0, Kp - K)))

    inputs = [a_p, w_p, b_p]
    in_specs = [
        pl.BlockSpec((tm, tk), lambda i, j, k: (i, k)),
        pl.BlockSpec((tk, tn), lambda i, j, k: (k, j)),
        pl.BlockSpec((1, tn), lambda i, j, k: (0, j)),
    ]
    if gate is not None:
        g_p = jnp.pad(gate.astype(jnp.float32), ((0, Mp - M), (0, 0)))
        inputs.append(g_p)
        in_specs.append(pl.BlockSpec((tm, 1), lambda i, j, k: (i, 0)))
    if residual is not None:
        r_p = jnp.pad(residual.astype(jnp.bfloat16),
                      ((0, Mp - M), (0, Np - residual.shape[1])))
        inputs.append(r_p)
        in_specs.append(pl.BlockSpec((tm, tn), lambda i, j, k: (i, j)))

    grid = (Mp // tm, Np // tn, Kp // tk)

    out = pl.pallas_call(
        _make_mm_kernel(relu, gate is not None, residual is not None),
        out_shape=jax.ShapeDtypeStruct((Mp, Np), out_dtype),
        grid_spec=pltpu.PrefetchScalarGridSpec(
            num_scalar_prefetch=0,
            grid=grid,
            in_specs=in_specs,
            out_specs=pl.BlockSpec((tm, tn), lambda i, j, k: (i, j)),
            scratch_shapes=[pltpu.VMEM((tm, tn), jnp.float32)],
        ),
        compiler_params=pltpu.CompilerParams(
            dimension_semantics=("parallel", "parallel", "arbitrary")),
    )(*inputs)
    return out[:M, :n_out]


# ----------------------------------------------------------------------------
# Conv wrapper: PyTorch Conv2d(bias=False) + eval BN (+ReLU) via im2col matmul
# ----------------------------------------------------------------------------

def _pair(v):
    return (v, v) if isinstance(v, int) else tuple(v)


def _im2col(x, kh, kw, stride, padding, dilation):
    """x: [B,H,W,C] (bf16) -> ([B*Hout*Wout, kh*kw*C], Hout, Wout)."""
    # TODO(synk): im2col is still materialized in HBM (in bf16); a fully
    #             in-kernel im2col (shifted-window BlockSpecs) is not done.
    B, H, W, C = x.shape
    sh, sw = stride
    ph, pw = padding
    dh, dw = dilation
    Hout = (H + 2 * ph - dh * (kh - 1) - 1) // sh + 1
    Wout = (W + 2 * pw - dw * (kw - 1) - 1) // sw + 1
    xp = jnp.pad(x, ((0, 0), (ph, ph), (pw, pw), (0, 0)))
    cols = []
    for i in range(kh):
        for j in range(kw):
            patch = lax.slice(
                xp,
                (0, i * dh, j * dw, 0),
                (B, i * dh + (Hout - 1) * sh + 1, j * dw + (Wout - 1) * sw + 1, C),
                (1, sh, sw, 1))
            cols.append(patch)
    col = jnp.stack(cols, axis=3).reshape(B * Hout * Wout, kh * kw * C)
    return col, Hout, Wout


def conv_bn(x, p, relu=False, gate=None, residual=None, out_dtype=ACT_DTYPE):
    x = x.astype(ACT_DTYPE)
    B = x.shape[0]
    kh, kw = p["ksize"]
    if (kh, kw) == (1, 1) and p["stride"] == (1, 1) and p["padding"] == (0, 0):
        Hout, Wout = x.shape[1], x.shape[2]
        col = x.reshape(B * Hout * Wout, x.shape[3])
    else:
        col, Hout, Wout = _im2col(x, kh, kw, p["stride"], p["padding"],
                                  p["dilation"])
    g = None if gate is None else gate.astype(jnp.float32).reshape(
        B * Hout * Wout, 1)
    r = None if residual is None else residual.reshape(
        B * Hout * Wout, residual.shape[-1])
    out = _matmul_affine(col, p["w"], p["b"], g, r,
                         n_out=p["cout"], relu=relu, out_dtype=out_dtype)
    return out.reshape(B, Hout, Wout, p["cout"])


# ----------------------------------------------------------------------------
# Plain-JAX glue: pooling & bilinear resize
# ----------------------------------------------------------------------------

def max_pool_3x3_s2_p1(x):
    xf = x.astype(jnp.float32)
    out = lax.reduce_window(xf, -jnp.inf, lax.max, (1, 3, 3, 1), (1, 2, 2, 1),
                            ((0, 0), (1, 1), (1, 1), (0, 0)))
    return out.astype(x.dtype)


def avg_pool(x, k, stride, pad, count_include_pad):
    # TODO(synk): PyTorch's downsample AvgPool2d uses ceil_mode=True; results
    #             are identical for the even spatial sizes used here.
    xf = x.astype(jnp.float32)
    win = (1, k, k, 1)
    strd = (1, stride, stride, 1)
    padc = ((0, 0), (pad, pad), (pad, pad), (0, 0))
    s = lax.reduce_window(xf, 0.0, lax.add, win, strd, padc)
    if count_include_pad:
        out = s / float(k * k)
    else:
        ones = jnp.ones((1, x.shape[1], x.shape[2], 1), jnp.float32)
        cnt = lax.reduce_window(ones, 0.0, lax.add, win, strd, padc)
        out = s / cnt
    return out.astype(x.dtype)


def bilinear(x, oh, ow, align_corners):
    """Matches torch F.interpolate(mode='bilinear')."""
    B, H, W, C = x.shape

    def coords(out_n, in_n):
        if align_corners:
            if out_n == 1:
                return jnp.zeros((1,), jnp.float32)
            return jnp.arange(out_n, dtype=jnp.float32) * ((in_n - 1) / (out_n - 1))
        scale = in_n / out_n
        c = (jnp.arange(out_n, dtype=jnp.float32) + 0.5) * scale - 0.5
        return jnp.clip(c, 0.0, in_n - 1)

    ys, xs = coords(oh, H), coords(ow, W)
    y0 = jnp.floor(ys).astype(jnp.int32)
    x0 = jnp.floor(xs).astype(jnp.int32)
    y1 = jnp.minimum(y0 + 1, H - 1)
    x1 = jnp.minimum(x0 + 1, W - 1)
    wy = (ys - y0.astype(jnp.float32))[None, :, None, None]
    wx = (xs - x0.astype(jnp.float32))[None, None, :, None]

    def gather(yi, xi):
        return x[:, yi, :, :][:, :, xi, :]

    v00, v01 = gather(y0, x0), gather(y0, x1)
    v10, v11 = gather(y1, x0), gather(y1, x1)
    top = v00 * (1 - wx) + v01 * wx
    bot = v10 * (1 - wx) + v11 * wx
    return top * (1 - wy) + bot * wy


def up2(x):   # nn.Upsample(scale_factor=2, mode='bilinear', align_corners=True)
    return bilinear(x, x.shape[1] * 2, x.shape[2] * 2, True)


# ----------------------------------------------------------------------------
# Deterministic parameter construction (BN folded, weights pre-padded in bf16)
# ----------------------------------------------------------------------------

_KEY = [jax.random.PRNGKey(42)]


def _next_key():
    _KEY[0], sub = jax.random.split(_KEY[0])
    return sub


def _pack_wb(w2, bias, kh, kw, cin, cout, stride, padding, dilation):
    K, N = w2.shape
    Kp, Np = _round_up(K, 128), _round_up(N, 128)
    w_p = jnp.pad(w2.astype(jnp.bfloat16), ((0, Kp - K), (0, Np - N)))
    b_p = jnp.pad(bias.astype(jnp.float32)[None, :], ((0, 0), (0, Np - N)))
    return dict(w=w_p, b=b_p, w_raw=w2, b_raw=bias,
                ksize=(kh, kw), cout=cout, cin=cin,
                stride=stride, padding=padding, dilation=dilation)


def basic(cin, cout, kh, kw, stride=1, padding=0, dilation=1, with_bn=True):
    """Conv2d(bias=False) + BatchNorm2d (eval: mean=0, var=1, gamma=1, beta=0)."""
    stride, padding, dilation = _pair(stride), _pair(padding), _pair(dilation)
    fan_in = cin * kh * kw
    w = jax.random.normal(_next_key(), (kh, kw, cin, cout),
                          jnp.float32) / math.sqrt(fan_in)
    if with_bn:
        w = w * (1.0 / math.sqrt(1.0 + BN_EPS))      # fold eval-mode BN scale
        bias = jnp.zeros((cout,), jnp.float32)
    else:   # plain conv with bias (aggregation.conv5)
        bound = 1.0 / math.sqrt(fan_in)
        bias = jax.random.uniform(_next_key(), (cout,), jnp.float32, -bound, bound)
    return _pack_wb(w.reshape(kh * kw * cin, cout), bias, kh, kw, cin, cout,
                    stride, padding, dilation)


def fuse_1x1(parts):
    """Merge several 1x1 convs that read the same input into one matmul (along N)."""
    w = jnp.concatenate([p["w_raw"] for p in parts], axis=1)
    b = jnp.concatenate([p["b_raw"] for p in parts], axis=0)
    cin = parts[0]["cin"]
    return _pack_wb(w, b, 1, 1, cin, w.shape[1], (1, 1), (0, 0), (1, 1))


def make_block(inplanes, planes, stride, downsample, stype, baseWidth=26, scale=4):
    width = int(math.floor(planes * (baseWidth / 64.0)))
    blk = dict(stype=stype, scale=scale, width=width, stride=stride,
               downsample=downsample)
    blk["conv1"] = basic(inplanes, width * scale, 1, 1)
    blk["convs"] = [basic(width, width, 3, 3, stride=stride, padding=1)
                    for _ in range(scale - 1)]
    blk["conv3"] = basic(width * scale, planes * 4, 1, 1)
    return blk


def make_layer(inplanes, planes, blocks, stride):
    ds = dict(stride=stride, conv=basic(inplanes, planes * 4, 1, 1))
    layers = [make_block(inplanes, planes, stride, ds, "stage")]
    inplanes = planes * 4
    for _ in range(1, blocks):
        layers.append(make_block(inplanes, planes, 1, None, "normal"))
    return layers, inplanes


def make_res2net():
    p = {}
    p["stem1"] = basic(3, 32, 3, 3, stride=2, padding=1)
    p["stem2"] = basic(32, 32, 3, 3, padding=1)
    p["stem3"] = basic(32, 64, 3, 3, padding=1)        # conv + resnet.bn1
    inplanes = 64
    p["layer1"], inplanes = make_layer(inplanes, 64, 3, 1)
    p["layer2"], inplanes = make_layer(inplanes, 128, 4, 2)
    p["layer3"], inplanes = make_layer(inplanes, 256, 6, 2)
    p["layer4"], inplanes = make_layer(inplanes, 512, 3, 2)
    return p


def make_rfb(cin, cout):
    b0 = basic(cin, cout, 1, 1)
    b1 = [basic(cin, cout, 1, 1),
          basic(cout, cout, 1, 3, padding=(0, 1)),
          basic(cout, cout, 3, 1, padding=(1, 0)),
          basic(cout, cout, 3, 3, padding=3, dilation=3)]
    b2 = [basic(cin, cout, 1, 1),
          basic(cout, cout, 1, 5, padding=(0, 2)),
          basic(cout, cout, 5, 1, padding=(2, 0)),
          basic(cout, cout, 3, 3, padding=5, dilation=5)]
    b3 = [basic(cin, cout, 1, 1),
          basic(cout, cout, 1, 7, padding=(0, 3)),
          basic(cout, cout, 7, 1, padding=(3, 0)),
          basic(cout, cout, 3, 3, padding=7, dilation=7)]
    conv_res = basic(cin, cout, 1, 1)
    return dict(
        first=fuse_1x1([b0, b1[0], b2[0], b3[0], conv_res]),  # one shared matmul
        b1=b1[1:], b2=b2[1:], b3=b3[1:],
        conv_cat=basic(4 * cout, cout, 3, 3, padding=1),
        cout=cout)


def make_aggregation(ch):
    return dict(
        cu1=basic(ch, ch, 3, 3, padding=1),
        cu2=basic(ch, ch, 3, 3, padding=1),
        cu3=basic(ch, ch, 3, 3, padding=1),
        cu4=basic(ch, ch, 3, 3, padding=1),
        cu5=basic(2 * ch, 2 * ch, 3, 3, padding=1),
        cc2=basic(2 * ch, 2 * ch, 3, 3, padding=1),
        cc3=basic(3 * ch, 3 * ch, 3, 3, padding=1),
        conv4=basic(3 * ch, 3 * ch, 3, 3, padding=1),
        conv5=basic(3 * ch, 1, 1, 1, with_bn=False),   # Conv2d(3ch, 1, 1) with bias
    )


def make_pranet(channel=32):
    return dict(
        resnet=make_res2net(),
        rfb2=make_rfb(512, channel),
        rfb3=make_rfb(1024, channel),
        rfb4=make_rfb(2048, channel),
        agg=make_aggregation(channel),
        ra4=[basic(2048, 256, 1, 1),
             basic(256, 256, 5, 5, padding=2),
             basic(256, 256, 5, 5, padding=2),
             basic(256, 256, 5, 5, padding=2),
             basic(256, 1, 1, 1)],
        ra3=[basic(1024, 64, 1, 1),
             basic(64, 64, 3, 3, padding=1),
             basic(64, 64, 3, 3, padding=1),
             basic(64, 1, 3, 3, padding=1)],
        ra2=[basic(512, 64, 1, 1),
             basic(64, 64, 3, 3, padding=1),
             basic(64, 64, 3, 3, padding=1),
             basic(64, 1, 3, 3, padding=1)],
    )


# ----------------------------------------------------------------------------
# Forward passes
# ----------------------------------------------------------------------------

def block_fwd(x, blk):
    # residual first, so the add+ReLU can ride in conv3's matmul epilogue
    if blk["downsample"] is not None:
        ds = blk["downsample"]
        res = x
        if ds["stride"] != 1:
            res = avg_pool(res, ds["stride"], ds["stride"], 0,
                           count_include_pad=False)
        residual = conv_bn(res, ds["conv"])
    else:
        residual = x

    out = conv_bn(x, blk["conv1"], relu=True)
    w, scale = blk["width"], blk["scale"]
    nums = scale - 1
    spx = [out[..., i * w:(i + 1) * w] for i in range(scale)]
    sp = None
    outs = []
    for i in range(nums):
        if i == 0 or blk["stype"] == "stage":
            sp = spx[i]
        else:
            sp = sp + spx[i]
        sp = conv_bn(sp, blk["convs"][i], relu=True)
        outs.append(sp)
    if blk["stype"] == "normal":
        outs.append(spx[nums])
    else:
        outs.append(avg_pool(spx[nums], 3, blk["stride"], 1,
                             count_include_pad=True))
    cat = jnp.concatenate(outs, axis=-1)
    # conv3 + BN + residual-add + ReLU, all in one kernel epilogue
    return conv_bn(cat, blk["conv3"], residual=residual, relu=True)


def layer_fwd(x, blocks):
    for blk in blocks:
        x = block_fwd(x, blk)
    return x


def rfb_fwd(x, p):
    c = p["cout"]
    first = conv_bn(x, p["first"])        # [B,H,W,5c]: b0 | b1_0 | b2_0 | b3_0 | conv_res
    x0 = first[..., 0 * c:1 * c]
    t1 = first[..., 1 * c:2 * c]
    t2 = first[..., 2 * c:3 * c]
    t3 = first[..., 3 * c:4 * c]
    res = first[..., 4 * c:5 * c]
    for conv in p["b1"]:
        t1 = conv_bn(t1, conv)
    for conv in p["b2"]:
        t2 = conv_bn(t2, conv)
    for conv in p["b3"]:
        t3 = conv_bn(t3, conv)
    cat = jnp.concatenate([x0, t1, t2, t3], axis=-1)
    # relu(conv_cat(cat) + conv_res(x)) fused into the conv_cat epilogue
    return conv_bn(cat, p["conv_cat"], residual=res, relu=True)


def agg_fwd(x1, x2, x3, p):
    x1_1 = x1
    x2_1 = conv_bn(up2(x1), p["cu1"]) * x2
    x3_1 = conv_bn(up2(up2(x1)), p["cu2"]) * conv_bn(up2(x2), p["cu3"]) * x3
    x2_2 = jnp.concatenate([x2_1, conv_bn(up2(x1_1), p["cu4"])], axis=-1)
    x2_2 = conv_bn(x2_2, p["cc2"])
    x3_2 = jnp.concatenate([x3_1, conv_bn(up2(x2_2), p["cu5"])], axis=-1)
    x3_2 = conv_bn(x3_2, p["cc3"])
    x = conv_bn(x3_2, p["conv4"])
    return conv_bn(x, p["conv5"], out_dtype=jnp.float32)   # plain conv + bias


def pranet_forward(params, x_nchw):
    x = jnp.transpose(x_nchw, (0, 2, 3, 1)).astype(jnp.float32)   # NCHW -> NHWC
    r = params["resnet"]
    x = conv_bn(x, r["stem1"], relu=True)
    x = conv_bn(x, r["stem2"], relu=True)
    x = conv_bn(x, r["stem3"], relu=True)          # conv + bn1 + relu
    x = max_pool_3x3_s2_p1(x)
    x1 = layer_fwd(x, r["layer1"])
    x2 = layer_fwd(x1, r["layer2"])
    x3 = layer_fwd(x2, r["layer3"])
    x4 = layer_fwd(x3, r["layer4"])

    x2_rfb = rfb_fwd(x2, params["rfb2"])
    x3_rfb = rfb_fwd(x3, params["rfb3"])
    x4_rfb = rfb_fwd(x4, params["rfb4"])
    ra5_feat = agg_fwd(x4_rfb, x3_rfb, x2_rfb, params["agg"])

    B, H8, W8, _ = ra5_feat.shape
    lateral_map_5 = bilinear(ra5_feat, H8 * 8, W8 * 8, False)
    crop_4 = bilinear(ra5_feat, H8 // 4, W8 // 4, False)

    # reverse-attention gate fused into the 1x1 conv (exact: gate commutes with K)
    g4 = 1.0 - jax.nn.sigmoid(crop_4)
    x = conv_bn(x4, params["ra4"][0], gate=g4)
    x = conv_bn(x, params["ra4"][1], relu=True)
    x = conv_bn(x, params["ra4"][2], relu=True)
    x = conv_bn(x, params["ra4"][3], relu=True)
    ra4_feat = conv_bn(x, params["ra4"][4], out_dtype=jnp.float32)
    x = ra4_feat + crop_4
    _, H32, W32, _ = x.shape
    lateral_map_4 = bilinear(x, H32 * 32, W32 * 32, False)
    crop_3 = bilinear(x, H32 * 2, W32 * 2, False)

    g3 = 1.0 - jax.nn.sigmoid(crop_3)
    x = conv_bn(x3, params["ra3"][0], gate=g3)
    x = conv_bn(x, params["ra3"][1], relu=True)
    x = conv_bn(x, params["ra3"][2], relu=True)
    ra3_feat = conv_bn(x, params["ra3"][3], out_dtype=jnp.float32)
    x = ra3_feat + crop_3
    _, H16, W16, _ = x.shape
    lateral_map_3 = bilinear(x, H16 * 16, W16 * 16, False)
    crop_2 = bilinear(x, H16 * 2, W16 * 2, False)

    g2 = 1.0 - jax.nn.sigmoid(crop_2)
    x = conv_bn(x2, params["ra2"][0], gate=g2)
    x = conv_bn(x, params["ra2"][1], relu=True)
    x = conv_bn(x, params["ra2"][2], relu=True)
    ra2_feat = conv_bn(x, params["ra2"][3], out_dtype=jnp.float32)
    x = ra2_feat + crop_2
    lateral_map_2 = bilinear(x, x.shape[1] * 8, x.shape[2] * 8, False)

    to_nchw = lambda t: jnp.transpose(t, (0, 3, 1, 2))
    return (to_nchw(lateral_map_5), to_nchw(lateral_map_4),
            to_nchw(lateral_map_3), to_nchw(lateral_map_2))


# ----------------------------------------------------------------------------
# Main
# ----------------------------------------------------------------------------

if __name__ == "__main__":
    # Small input consistent with the architecture (3 channels, spatial 64
    # keeps all strided stages >= 2x2).
    x = jax.random.normal(jax.random.PRNGKey(0), (1, 3, 64, 64), jnp.float32)

    params = make_pranet(channel=32)

    outs = pranet_forward(params, x)
    outs = jax.block_until_ready(outs)

    expected = (1, 1, 64, 64)
    assert all(o.shape == expected for o in outs), [o.shape for o in outs]
    assert all(bool(jnp.all(jnp.isfinite(o))) for o in outs)

    print("KERNEL_OK")
</pallas_src>

<mosaic_0001>
module attributes {stable_mosaic.version = 11 : i64} {
  func.func @kernel(%arg0: i32, %arg1: i32, %arg2: i32, %arg3: memref<512x128xbf16, #tpu.memory_space<vmem>>, %arg4: memref<128x128xbf16, #tpu.memory_space<vmem>>, %arg5: memref<1x128xf32, #tpu.memory_space<vmem>>, %arg6: memref<512x128xbf16, #tpu.memory_space<vmem>>, %arg7: memref<512x128xf32, #tpu.memory_space<vmem>>) attributes {dimension_semantics = [#tpu.dimension_semantics<parallel>, #tpu.dimension_semantics<parallel>, #tpu.dimension_semantics<arbitrary>], iteration_bounds = array<i64: 2, 1, 1>, scalar_prefetch = 0 : i64, scratch_operands = 1 : i64, tpu.core_type = #tpu.core_type<tc>, window_params = [{transform_indices = @transform_0, window_bounds = array<i64: 512, 128>}, {transform_indices = @transform_1, window_bounds = array<i64: 128, 128>}, {transform_indices = @transform_2, window_bounds = array<i64: 1, 128>}, {transform_indices = @transform_3, window_bounds = array<i64: 512, 128>}]} {
    %c0_i32 = arith.constant 0 : i32
    %0 = arith.cmpi eq, %arg2, %c0_i32 : i32
    %1 = arith.extui %0 : i1 to i32
    %c0_i32_0 = arith.constant 0 : i32
    %2 = arith.cmpi ne, %1, %c0_i32_0 : i32
    scf.if %2 {
      %cst_10 = arith.constant 0.000000e+00 : f32
      %12 = vector.broadcast %cst_10 : f32 to vector<512x128xf32>
      %c0_11 = arith.constant 0 : index
      %c0_12 = arith.constant 0 : index
      %13 = vector.load %arg7[%c0_11, %c0_12] : memref<512x128xf32, #tpu.memory_space<vmem>>, vector<512x128xf32>
      tpu.vector_store %arg7[%c0_11, %c0_12], %12 {strides = array<i32>} : memref<512x128xf32, #tpu.memory_space<vmem>>, vector<512x128xf32>,
    } else {
    }
    %c0 = arith.constant 0 : index
    %c0_1 = arith.constant 0 : index
    %3 = vector.load %arg7[%c0, %c0_1] : memref<512x128xf32, #tpu.memory_space<vmem>>, vector<512x128xf32>
    %c0_2 = arith.constant 0 : index
    %c0_3 = arith.constant 0 : index
    %4 = vector.load %arg3[%c0_2, %c0_3] : memref<512x128xbf16, #tpu.memory_space<vmem>>, vector<512x128xbf16>
    %c0_4 = arith.constant 0 : index
    %c0_5 = arith.constant 0 : index
    %5 = vector.load %arg4[%c0_4, %c0_5] : memref<128x128xbf16, #tpu.memory_space<vmem>>, vector<128x128xbf16>
    %cst = arith.constant dense<0.000000e+00> : vector<512x128xf32>
    %6 = tpu.matmul %4, %5, %cst {dimension_numbers = #tpu.dot_dimension_numbers<[1], [0], [0], [1], [0, 0, 1, 1], [], []>} : vector<512x128xbf16>, vector<128x128xbf16>, vector<512x128xf32> -> vector<512x128xf32>
    %7 = arith.addf %3, %6 : vector<512x128xf32>
    %c0_6 = arith.constant 0 : index
    %c0_7 = arith.constant 0 : index
    %8 = vector.load %arg7[%c0_6, %c0_7] : memref<512x128xf32, #tpu.memory_space<vmem>>, vector<512x128xf32>
    tpu.vector_store %arg7[%c0_6, %c0_7], %7 {strides = array<i32>} : memref<512x128xf32, #tpu.memory_space<vmem>>, vector<512x128xf32>,
    %c0_i32_8 = arith.constant 0 : i32
    %9 = arith.cmpi eq, %arg2, %c0_i32_8 : i32
    %10 = arith.extui %9 : i1 to i32
    %c0_i32_9 = arith.constant 0 : i32
    %11 = arith.cmpi ne, %10, %c0_i32_9 : i32
    scf.if %11 {
      %c0_10 = arith.constant 0 : index
      %c0_11 = arith.constant 0 : index
      %12 = vector.load %arg7[%c0_10, %c0_11] : memref<512x128xf32, #tpu.memory_space<vmem>>, vector<512x128xf32>
      %c0_12 = arith.constant 0 : index
      %c0_13 = arith.constant 0 : index
      %13 = vector.load %arg5[%c0_12, %c0_13] : memref<1x128xf32, #tpu.memory_space<vmem>>, vector<1x128xf32>
      %14 = vector.broadcast %13 : vector<1x128xf32> to vector<512x128xf32>
      %15 = arith.addf %12, %14 : vector<512x128xf32>
      %cst_14 = arith.constant 0.000000e+00 : f32
      %16 = vector.broadcast %cst_14 : f32 to vector<512x128xf32>
      %17 = arith.maximumf %15, %16 : vector<512x128xf32>
      %18 = arith.truncf %17 : vector<512x128xf32> to vector<512x128xbf16>
      %c0_15 = arith.constant 0 : index
      %c0_16 = arith.constant 0 : index
      %19 = vector.load %arg6[%c0_15, %c0_16] : memref<512x128xbf16, #tpu.memory_space<vmem>>, vector<512x128xbf16>
      tpu.vector_store %arg6[%c0_15, %c0_16], %18 {strides = array<i32>} : memref<512x128xbf16, #tpu.memory_space<vmem>>, vector<512x128xbf16>,
    } else {
    }
    return
  }
  func.func @transform_0(%arg0: i32, %arg1: i32, %arg2: i32) -> (i32, i32) {
    %c0_i32 = arith.constant 0 : i32
    return %arg0, %arg2 : i32, i32
  }
  func.func @transform_1(%arg0: i32, %arg1: i32, %arg2: i32) -> (i32, i32) {
    %c0_i32 = arith.constant 0 : i32
    return %arg2, %arg1 : i32, i32
  }
  func.func @transform_2(%arg0: i32, %arg1: i32, %arg2: i32) -> (i32, i32) {
    %c0_i32 = arith.constant 0 : i32
    %c0_i32_0 = arith.constant 0 : i32
    return %c0_i32, %arg1 : i32, i32
  }
  func.func @transform_3(%arg0: i32, %arg1: i32, %arg2: i32) -> (i32, i32) {
    %c0_i32 = arith.constant 0 : i32
    return %arg0, %arg1 : i32, i32
  }
}

</mosaic_0001>

<bundles_post_ra>
// kernel: _matmul_affine.1
= control target key start
LH: loop header
LB: loop body
LE: loop exit
PB: predicated region body
PF: predicated region fallthrough
CT: control target
= control target key end

     0   :  { %s2379_s12 = smov 0   ;;  %s2381_s13 = smov 0   ;;  %s2580_s0 = inlined_call_operand.vmem [shape: bf16[1024,128], index: 0, kind: input, shape index: {}]   ;;  %s2581_s1 = inlined_call_operand.vmem [shape: bf16[128,128], index: 1, kind: input, shape index: {}]   ;;  %s2582_s2 = inlined_call_operand.vmem [shape: f32[1,128], index: 2, kind: input, shape index: {}]   ;;  %s2583_s3 = inlined_call_operand.vmem [shape: bf16[1024,128], index: 3, kind: output, shape index: {}]  }
   0x1   :  { %s2383_s14 = smov 0  }
   0x2 LB: > { %s32_s15 = sadd.s32 1, %s2353_s13  ;;  %p1768_p0 = scmp.ge.s32.totalorder %s2357_s14, 1  ;;  %s2357_s14 = sphi %s2383_s14, %s13_s14   ;;  %s2353_s13 = sphi %s2381_s13, %s2585_s13   ;;  %s2349_s12 = sphi %s2379_s12, %s2584_s12  }
   0x3   : > { %p34_p1 = scmp.ge.s32.totalorder %s32_s15, 2  ;;  %p188_p2 = scmp.lt.s32.totalorder %s2357_s14, 3 }
   0x5   : > { %s2587_s15 = smov (%p34_p1, %s32_s15), 0  ;;  %p189_p3 = pnand %p1768_p0, %p188_p2 }
   0x6   : > { %s1769_s18 = sshll.u32 (!%p189_p3), %s2349_s12, 6 }
   0x7   : > { %192 = sbr.rel (%p189_p3) target bundleno = 307 (0x133), region = 32  ;;  %p230_p4 = scmp.lt.s32.totalorder (!%p189_p3), %s1769_s18, 127 }
   0xc   : > { %v2295_v0 = vld [vmem:[%s2581_s1 + $0x38] sm:$0xff]   ;;  %v2296_v1 = vld [vmem:[%s2581_s1 + $0x30] sm:$0xff]   ;;  %s2589_s18 = smov (!%p230_p4, %s1769_s18), 127  ;;  %v2297_v2 = vld [vmem:[%s2581_s1 + $0x28] sm:$0xff]  }
   0xd   : > { %2175 = vmatprep.subr.bf16.mxu0 %v2295_v0  ;;  %2255 = vmatprep.subr.bf16.mxu1 %v2295_v0  ;;  %s1770_s23 = sshll.u32 %s2589_s18, 2  ;;  %v2298_v3 = vld [vmem:[%s2581_s1 + $0x20] sm:$0xff]   ;;  %v2299_v6 = vld [vmem:[%s2581_s1 + $0x18] sm:$0xff]   ;;  %v2300_v7 = vld [vmem:[%s2581_s1 + $0x10] sm:$0xff]  }
   0xe   : > { %2176 = vmatpush3.bf16.msra.mxu0 %v2295_v0  ;;  %2263 = vmatpush3.bf16.msra.mxu1 %v2295_v0  ;;  %s2414_s26 = scalar_lea.vmem %s2580_s0, %s1770_s23  ;;  %v2301_v8 = vld [vmem:[%s2581_s1 + $0x8] sm:$0xff]   ;;  %v2302_v9 = vld [vmem:[%s2581_s1] sm:$0xff]   ;;  %s2481_s17 = scalar_lea.vmem %s2583_s3, %s1770_s23 }
   0xf   : > { %2177 = vmatprep.subr.bf16.mxu0 %v2296_v1  ;;  %2256 = vmatprep.subr.bf16.mxu1 %v2296_v1  ;;  %v2303_v4 = vld [vmem:[%s2414_s26] sm:$0xff]   ;;  %v2305_v10 = vld [vmem:[%s2414_s26 + $0x8] sm:$0xff]   ;;  %v2307_v12 = vld [vmem:[%s2414_s26 + $0x10] sm:$0xff]  }
  0x10   : > { %v2304_v5 = vld [vmem:[%s2414_s26 + $0x80] sm:$0xff]   ;;  %2191 = vmatprep.mubr.bf16.mxu0 %v2303_v4  ;;  %v2306_v11 = vld [vmem:[%s2414_s26 + $0x88] sm:$0xff]   ;;  %v2308_v13 = vld [vmem:[%s2414_s26 + $0x90] sm:$0xff]  }
  0x11   : > { %2223 = vmatprep.mubr.bf16.mxu1 %v2304_v5  ;;  %v2309_v14 = vld [vmem:[%s2414_s26 + $0x18] sm:$0xff]   ;;  %v2311_v16 = vld [vmem:[%s2414_s26 + $0x20] sm:$0xff]   ;;  %v2313_v18 = vld [vmem:[%s2414_s26 + $0x28] sm:$0xff]  }
  0x12   : > { %2178 = vmatpush3.bf16.msra.mxu0 %v2296_v1  ;;  %2264 = vmatpush3.bf16.msra.mxu1 %v2296_v1  ;;  %v2310_v15 = vld [vmem:[%s2414_s26 + $0x98] sm:$0xff]   ;;  %v2312_v17 = vld [vmem:[%s2414_s26 + $0xa0] sm:$0xff]   ;;  %v2314_v19 = vld [vmem:[%s2414_s26 + $0xa8] sm:$0xff]  }
  0x13   : > { %2179 = vmatprep.subr.bf16.mxu0 %v2297_v2  ;;  %2257 = vmatprep.subr.bf16.mxu1 %v2297_v2  ;;  %v2315_v20 = vld [vmem:[%s2414_s26 + $0x30] sm:$0xff]   ;;  %v2317_v22 = vld [vmem:[%s2414_s26 + $0x38] sm:$0xff]   ;;  %v2319_v24 = vld [vmem:[%s2414_s26 + $0x40] sm:$0xff]  }
  0x14   : > { %v2316_v21 = vld [vmem:[%s2414_s26 + $0xb0] sm:$0xff]   ;;  %v2318_v23 = vld [vmem:[%s2414_s26 + $0xb8] sm:$0xff]   ;;  %v2320_v25 = vld [vmem:[%s2414_s26 + $0xc0] sm:$0xff]  }
  0x15   : > { %v2321_v26 = vld [vmem:[%s2414_s26 + $0x48] sm:$0xff]   ;;  %v2323_v28 = vld [vmem:[%s2414_s26 + $0x50] sm:$0xff]   ;;  %v2325_v30 = vld [vmem:[%s2414_s26 + $0x58] sm:$0xff]  }
  0x16   : > { %2180 = vmatpush3.bf16.msra.mxu0 %v2297_v2  ;;  %2265 = vmatpush3.bf16.msra.mxu1 %v2297_v2  ;;  %v2322_v27 = vld [vmem:[%s2414_s26 + $0xc8] sm:$0xff]   ;;  %v2324_v29 = vld [vmem:[%s2414_s26 + $0xd0] sm:$0xff]   ;;  %v2326_v31 = vld [vmem:[%s2414_s26 + $0xd8] sm:$0xff]  }
  0x17   : > { %2181 = vmatprep.subr.bf16.mxu0 %v2298_v3  ;;  %2258 = vmatprep.subr.bf16.mxu1 %v2298_v3  ;;  %v2327_v32 = vld [vmem:[%s2414_s26 + $0x60] sm:$0xff]   ;;  %v2329_v34 = vld [vmem:[%s2414_s26 + $0x68] sm:$0xff]   ;;  %v2331_v36 = vld [vmem:[%s2414_s26 + $0x70] sm:$0xff]  }
  0x18   : > { %v2328_v33 = vld [vmem:[%s2414_s26 + $0xe0] sm:$0xff]   ;;  %v2330_v35 = vld [vmem:[%s2414_s26 + $0xe8] sm:$0xff]   ;;  %v2332_v37 = vld [vmem:[%s2414_s26 + $0xf0] sm:$0xff]  }
  0x19   : > { %v2333_v38 = vld [vmem:[%s2414_s26 + $0x78] sm:$0xff]   ;;  %v2466_v40 = vld [vmem:[%s2582_s2] ss:$0 sm:$0xff] }
  0x1a   : > { %2182 = vmatpush3.bf16.msra.mxu0 %v2298_v3  ;;  %2266 = vmatpush3.bf16.msra.mxu1 %v2298_v3  ;;  %v2334_v39 = vld [vmem:[%s2414_s26 + $0xf8] sm:$0xff]  }
  0x1b   : > { %2183 = vmatprep.subr.bf16.mxu0 %v2299_v6  ;;  %2259 = vmatprep.subr.bf16.mxu1 %v2299_v6 }
  0x1e   : > { %2184 = vmatpush3.bf16.msra.mxu0 %v2299_v6  ;;  %2267 = vmatpush3.bf16.msra.mxu1 %v2299_v6 }
  0x1f   : > { %2185 = vmatprep.subr.bf16.mxu0 %v2300_v7  ;;  %2260 = vmatprep.subr.bf16.mxu1 %v2300_v7 }
  0x22   : > { %2186 = vmatpush3.bf16.msra.mxu0 %v2300_v7  ;;  %2268 = vmatpush3.bf16.msra.mxu1 %v2300_v7 }
  0x23   : > { %2187 = vmatprep.subr.bf16.mxu0 %v2301_v8  ;;  %2261 = vmatprep.subr.bf16.mxu1 %v2301_v8 }
  0x26   : > { %2188 = vmatpush3.bf16.msra.mxu0 %v2301_v8  ;;  %2269 = vmatpush3.bf16.msra.mxu1 %v2301_v8 }
  0x27   : > { %2189 = vmatprep.subr.bf16.mxu0 %v2302_v9  ;;  %2262 = vmatprep.subr.bf16.mxu1 %v2302_v9 }
  0x2a   : > { %2190 = vmatpush3.bf16.msra.mxu0 %v2302_v9  ;;  %2270 = vmatpush3.bf16.msra.mxu1 %v2302_v9 }
  0x2d   : > { %2192 = vmatmul.mubr.bf16.vlgmr.msra.gmra.mxu0 %v2305_v10  ;;  %2224 = vmatmul.mubr.bf16.vlgmr.msra.gmra.mxu1 %v2306_v11 }
  0x2e   : > { %2195 = vmatprep.mubr.bf16.mxu0 %v2307_v12  ;;  %2227 = vmatprep.mubr.bf16.mxu1 %v2308_v13 }
  0x35   : > { %2196 = vmatmul.mubr.bf16.gmra.mxu0 %v2309_v14  ;;  %2228 = vmatmul.mubr.bf16.gmra.mxu1 %v2310_v15 }
  0x36   : > { %2199 = vmatprep.mubr.bf16.mxu0 %v2311_v16  ;;  %2231 = vmatprep.mubr.bf16.mxu1 %v2312_v17 }
  0x3d   : > { %2200 = vmatmul.mubr.bf16.gmra.mxu0 %v2313_v18  ;;  %2232 = vmatmul.mubr.bf16.gmra.mxu1 %v2314_v19 }
  0x3e   : > { %2203 = vmatprep.mubr.bf16.mxu0 %v2315_v20  ;;  %2235 = vmatprep.mubr.bf16.mxu1 %v2316_v21 }
  0x45   : > { %2204 = vmatmul.mubr.bf16.gmra.mxu0 %v2317_v22  ;;  %2236 = vmatmul.mubr.bf16.gmra.mxu1 %v2318_v23 }
  0x46   : > { %2207 = vmatprep.mubr.bf16.mxu0 %v2319_v24  ;;  %2239 = vmatprep.mubr.bf16.mxu1 %v2320_v25 }
  0x4d   : > { %2208 = vmatmul.mubr.bf16.gmra.mxu0 %v2321_v26  ;;  %2240 = vmatmul.mubr.bf16.gmra.mxu1 %v2322_v27 }
  0x4e   : > { %2211 = vmatprep.mubr.bf16.mxu0 %v2323_v28  ;;  %2243 = vmatprep.mubr.bf16.mxu1 %v2324_v29 }
  0x55   : > { %2212 = vmatmul.mubr.bf16.gmra.mxu0 %v2325_v30  ;;  %2244 = vmatmul.mubr.bf16.gmra.mxu1 %v2326_v31 }
  0x56   : > { %2215 = vmatprep.mubr.bf16.mxu0 %v2327_v32  ;;  %2247 = vmatprep.mubr.bf16.mxu1 %v2328_v33 }
  0x5d   : > { %2216 = vmatmul.mubr.bf16.gmra.mxu0 %v2329_v34  ;;  %2248 = vmatmul.mubr.bf16.gmra.mxu1 %v2330_v35 }
  0x5e   : > { %2219 = vmatprep.mubr.bf16.mxu0 %v2331_v36  ;;  %2251 = vmatprep.mubr.bf16.mxu1 %v2332_v37 }
  0x65   : > { %2220 = vmatmul.mubr.bf16.gmra.mxu0 %v2333_v38  ;;  %2252 = vmatmul.mubr.bf16.gmra.mxu1 %v2334_v39 }
  0xed   : > { %v2193_v41 = vpop.f32.mrf.mxu0  ;;  %v2225_v42 = vpop.f32.mrf.mxu1 }
  0xee   : > { %v1205_v43 = vadd.f32 %v2193_v41, %v2466_v40  ;;  %v1237_v44 = vadd.f32 %v2225_v42, %v2466_v40 }
  0xef   : > { %v746_v45 = vpop.f32.mrf.mxu0  ;;  %v874_v46 = vpop.f32.mrf.mxu1 }
  0xf0   : > { %v1203_v47 = vadd.f32 %v2466_v40, %v746_v45  ;;  %v1235_v48 = vadd.f32 %v2466_v40, %v874_v46  ;;  %v1269_v53 = vmax.f32 %v1205_v43, 0.0  ;;  %v1301_v54 = vmax.f32 %v1237_v44, 0.0 }
  0xf1   : > { %v2194_v49 = vpop.f32.mrf.mxu0  ;;  %v2226_v50 = vpop.f32.mrf.mxu1 }
  0xf2   : > { %v1206_v51 = vadd.f32 %v2194_v49, %v2466_v40  ;;  %v1238_v52 = vadd.f32 %v2226_v50, %v2466_v40  ;;  %v1267_v61 = vmax.f32 %v1203_v47, 0.0  ;;  %v1299_v62 = vmax.f32 %v1235_v48, 0.0 }
  0xf3   : > { %v749_v55 = vpop.f32.mrf.mxu0  ;;  %v877_v56 = vpop.f32.mrf.mxu1 }
  0xf4   : > { %v1270_v57 = vmax.f32 %v1206_v51, 0.0  ;;  %v1302_v58 = vmax.f32 %v1238_v52, 0.0  ;;  %v1204_v59 = vadd.f32 %v2466_v40, %v749_v55  ;;  %v1236_v60 = vadd.f32 %v2466_v40, %v877_v56 }
  0xf5   : > { %v2197_v63 = vpop.f32.mrf.mxu0  ;;  %v2229_v0 = vpop.f32.mrf.mxu1 }
  0xf6   : > { %v1952_v1 = vpack.c.bf16 %v1270_v57, %v1269_v53  ;;  %v2032_v2 = vpack.c.bf16 %v1302_v58, %v1301_v54  ;;  %v1268_v3 = vmax.f32 %v1204_v59, 0.0  ;;  %v1300_v4 = vmax.f32 %v1236_v60, 0.0 }
  0xf7   : > { %v1209_v5 = vadd.f32 %v2197_v63, %v2466_v40  ;;  %v1241_v6 = vadd.f32 %v2229_v0, %v2466_v40  ;;  %v762_v7 = vpop.f32.mrf.mxu0  ;;  %v890_v8 = vpop.f32.mrf.mxu1 }
  0xf8   : > { %2104 = vst [vmem:[%s2481_s17 + $0x8] sm:$0xff] %v1952_v1   ;;  %2120 = vst [vmem:[%s2481_s17 + $0x88] sm:$0xff] %v2032_v2   ;;  %v1947_v9 = vpack.c.bf16 %v1268_v3, %v1267_v61  ;;  %v2027_v10 = vpack.c.bf16 %v1300_v4, %v1299_v62  ;;  %v1207_v11 = vadd.f32 %v2466_v40, %v762_v7 }
  0xf9   : > { %v1239_v12 = vadd.f32 %v2466_v40, %v890_v8  ;;  %v2198_v13 = vpop.f32.mrf.mxu0  ;;  %v2230_v14 = vpop.f32.mrf.mxu1  ;;  %v1273_v17 = vmax.f32 %v1209_v5, 0.0  ;;  %v1305_v18 = vmax.f32 %v1241_v6, 0.0 }
  0xfa   : > { %1948 = vst [vmem:[%s2481_s17] sm:$0xff] %v1947_v9   ;;  %2119 = vst [vmem:[%s2481_s17 + $0x80] sm:$0xff] %v2027_v10   ;;  %v1210_v15 = vadd.f32 %v2198_v13, %v2466_v40  ;;  %v1242_v16 = vadd.f32 %v2230_v14, %v2466_v40  ;;  %v1271_v25 = vmax.f32 %v1207_v11, 0.0 }
  0xfb   : > { %v765_v19 = vpop.f32.mrf.mxu0  ;;  %v893_v20 = vpop.f32.mrf.mxu1  ;;  %v1303_v26 = vmax.f32 %v1239_v12, 0.0 }
  0xfc   : > { %v1274_v21 = vmax.f32 %v1210_v15, 0.0  ;;  %v1306_v22 = vmax.f32 %v1242_v16, 0.0  ;;  %v1208_v23 = vadd.f32 %v2466_v40, %v765_v19  ;;  %v1240_v24 = vadd.f32 %v2466_v40, %v893_v20 }
  0xfd   : > { %v2201_v27 = vpop.f32.mrf.mxu0  ;;  %v2233_v28 = vpop.f32.mrf.mxu1 }
  0xfe   : > { %v1962_v29 = vpack.c.bf16 %v1274_v21, %v1273_v17  ;;  %v2042_v30 = vpack.c.bf16 %v1306_v22, %v1305_v18  ;;  %v1272_v31 = vmax.f32 %v1208_v23, 0.0  ;;  %v1304_v32 = vmax.f32 %v1240_v24, 0.0 }
  0xff   : > { %v1213_v33 = vadd.f32 %v2201_v27, %v2466_v40  ;;  %v1245_v34 = vadd.f32 %v2233_v28, %v2466_v40  ;;  %v778_v35 = vpop.f32.mrf.mxu0  ;;  %v906_v36 = vpop.f32.mrf.mxu1 }
 0x100   : > { %2106 = vst [vmem:[%s2481_s17 + $0x18] sm:$0xff] %v1962_v29   ;;  %2122 = vst [vmem:[%s2481_s17 + $0x98] sm:$0xff] %v2042_v30   ;;  %v1957_v37 = vpack.c.bf16 %v1272_v31, %v1271_v25  ;;  %v2037_v38 = vpack.c.bf16 %v1304_v32, %v1303_v26  ;;  %v1211_v39 = vadd.f32 %v2466_v40, %v778_v35 }
 0x101   : > { %v1243_v41 = vadd.f32 %v2466_v40, %v906_v36  ;;  %v2202_v42 = vpop.f32.mrf.mxu0  ;;  %v2234_v43 = vpop.f32.mrf.mxu1  ;;  %v1277_v46 = vmax.f32 %v1213_v33, 0.0  ;;  %v1309_v47 = vmax.f32 %v1245_v34, 0.0 }
 0x102   : > { %2105 = vst [vmem:[%s2481_s17 + $0x10] sm:$0xff] %v1957_v37   ;;  %2121 = vst [vmem:[%s2481_s17 + $0x90] sm:$0xff] %v2037_v38   ;;  %v1214_v44 = vadd.f32 %v2202_v42, %v2466_v40  ;;  %v1246_v45 = vadd.f32 %v2234_v43, %v2466_v40  ;;  %v1275_v54 = vmax.f32 %v1211_v39, 0.0 }
 0x103   : > { %v781_v48 = vpop.f32.mrf.mxu0  ;;  %v909_v49 = vpop.f32.mrf.mxu1  ;;  %v1307_v55 = vmax.f32 %v1243_v41, 0.0 }
 0x104   : > { %v1278_v50 = vmax.f32 %v1214_v44, 0.0  ;;  %v1310_v51 = vmax.f32 %v1246_v45, 0.0  ;;  %v1212_v52 = vadd.f32 %v2466_v40, %v781_v48  ;;  %v1244_v53 = vadd.f32 %v2466_v40, %v909_v49 }
 0x105   : > { %v2205_v56 = vpop.f32.mrf.mxu0  ;;  %v2237_v57 = vpop.f32.mrf.mxu1 }
 0x106   : > { %v1972_v58 = vpack.c.bf16 %v1278_v50, %v1277_v46  ;;  %v2052_v59 = vpack.c.bf16 %v1310_v51, %v1309_v47  ;;  %v1276_v60 = vmax.f32 %v1212_v52, 0.0  ;;  %v1308_v61 = vmax.f32 %v1244_v53, 0.0 }
 0x107   : > { %v1217_v62 = vadd.f32 %v2205_v56, %v2466_v40  ;;  %v1249_v63 = vadd.f32 %v2237_v57, %v2466_v40  ;;  %v794_v0 = vpop.f32.mrf.mxu0  ;;  %v922_v1 = vpop.f32.mrf.mxu1 }
 0x108   : > { %2108 = vst [vmem:[%s2481_s17 + $0x28] sm:$0xff] %v1972_v58   ;;  %2124 = vst [vmem:[%s2481_s17 + $0xa8] sm:$0xff] %v2052_v59   ;;  %v1967_v2 = vpack.c.bf16 %v1276_v60, %v1275_v54  ;;  %v2047_v3 = vpack.c.bf16 %v1308_v61, %v1307_v55  ;;  %v1215_v4 = vadd.f32 %v2466_v40, %v794_v0 }
 0x109   : > { %v1247_v5 = vadd.f32 %v2466_v40, %v922_v1  ;;  %v2206_v6 = vpop.f32.mrf.mxu0  ;;  %v2238_v7 = vpop.f32.mrf.mxu1  ;;  %v1281_v10 = vmax.f32 %v1217_v62, 0.0  ;;  %v1313_v11 = vmax.f32 %v1249_v63, 0.0 }
 0x10a   : > { %2107 = vst [vmem:[%s2481_s17 + $0x20] sm:$0xff] %v1967_v2   ;;  %2123 = vst [vmem:[%s2481_s17 + $0xa0] sm:$0xff] %v2047_v3   ;;  %v1218_v8 = vadd.f32 %v2206_v6, %v2466_v40  ;;  %v1250_v9 = vadd.f32 %v2238_v7, %v2466_v40  ;;  %v1279_v18 = vmax.f32 %v1215_v4, 0.0 }
 0x10b   : > { %v797_v12 = vpop.f32.mrf.mxu0  ;;  %v925_v13 = vpop.f32.mrf.mxu1  ;;  %v1311_v19 = vmax.f32 %v1247_v5, 0.0 }
 0x10c   : > { %v1282_v14 = vmax.f32 %v1218_v8, 0.0  ;;  %v1314_v15 = vmax.f32 %v1250_v9, 0.0  ;;  %v1216_v16 = vadd.f32 %v2466_v40, %v797_v12  ;;  %v1248_v17 = vadd.f32 %v2466_v40, %v925_v13 }
 0x10d   : > { %v2209_v20 = vpop.f32.mrf.mxu0  ;;  %v2241_v21 = vpop.f32.mrf.mxu1 }
 0x10e   : > { %v1982_v22 = vpack.c.bf16 %v1282_v14, %v1281_v10  ;;  %v2062_v23 = vpack.c.bf16 %v1314_v15, %v1313_v11  ;;  %v1280_v24 = vmax.f32 %v1216_v16, 0.0  ;;  %v1312_v25 = vmax.f32 %v1248_v17, 0.0 }
 0x10f   : > { %v1221_v26 = vadd.f32 %v2209_v20, %v2466_v40  ;;  %v1253_v27 = vadd.f32 %v2241_v21, %v2466_v40  ;;  %v810_v28 = vpop.f32.mrf.mxu0  ;;  %v938_v29 = vpop.f32.mrf.mxu1 }
 0x110   : > { %2110 = vst [vmem:[%s2481_s17 + $0x38] sm:$0xff] %v1982_v22   ;;  %2126 = vst [vmem:[%s2481_s17 + $0xb8] sm:$0xff] %v2062_v23   ;;  %v1977_v30 = vpack.c.bf16 %v1280_v24, %v1279_v18  ;;  %v2057_v31 = vpack.c.bf16 %v1312_v25, %v1311_v19  ;;  %v1219_v32 = vadd.f32 %v2466_v40, %v810_v28 }
 0x111   : > { %v1251_v33 = vadd.f32 %v2466_v40, %v938_v29  ;;  %v2210_v34 = vpop.f32.mrf.mxu0  ;;  %v2242_v35 = vpop.f32.mrf.mxu1  ;;  %v1285_v38 = vmax.f32 %v1221_v26, 0.0  ;;  %v1317_v39 = vmax.f32 %v1253_v27, 0.0 }
 0x112   : > { %2109 = vst [vmem:[%s2481_s17 + $0x30] sm:$0xff] %v1977_v30   ;;  %2125 = vst [vmem:[%s2481_s17 + $0xb0] sm:$0xff] %v2057_v31   ;;  %v1222_v36 = vadd.f32 %v2210_v34, %v2466_v40  ;;  %v1254_v37 = vadd.f32 %v2242_v35, %v2466_v40  ;;  %v1283_v47 = vmax.f32 %v1219_v32, 0.0 }
 0x113   : > { %v813_v41 = vpop.f32.mrf.mxu0  ;;  %v941_v42 = vpop.f32.mrf.mxu1  ;;  %v1315_v48 = vmax.f32 %v1251_v33, 0.0 }
 0x114   : > { %v1286_v43 = vmax.f32 %v1222_v36, 0.0  ;;  %v1318_v44 = vmax.f32 %v1254_v37, 0.0  ;;  %v1220_v45 = vadd.f32 %v2466_v40, %v813_v41  ;;  %v1252_v46 = vadd.f32 %v2466_v40, %v941_v42 }
 0x115   : > { %v2213_v49 = vpop.f32.mrf.mxu0  ;;  %v2245_v50 = vpop.f32.mrf.mxu1 }
 0x116   : > { %v1992_v51 = vpack.c.bf16 %v1286_v43, %v1285_v38  ;;  %v2072_v52 = vpack.c.bf16 %v1318_v44, %v1317_v39  ;;  %v1284_v53 = vmax.f32 %v1220_v45, 0.0  ;;  %v1316_v54 = vmax.f32 %v1252_v46, 0.0 }
 0x117   : > { %v1225_v55 = vadd.f32 %v2213_v49, %v2466_v40  ;;  %v1257_v56 = vadd.f32 %v2245_v50, %v2466_v40  ;;  %v826_v57 = vpop.f32.mrf.mxu0  ;;  %v954_v58 = vpop.f32.mrf.mxu1 }
 0x118   : > { %2112 = vst [vmem:[%s2481_s17 + $0x48] sm:$0xff] %v1992_v51   ;;  %2128 = vst [vmem:[%s2481_s17 + $0xc8] sm:$0xff] %v2072_v52   ;;  %v1987_v59 = vpack.c.bf16 %v1284_v53, %v1283_v47  ;;  %v2067_v60 = vpack.c.bf16 %v1316_v54, %v1315_v48  ;;  %v1223_v61 = vadd.f32 %v2466_v40, %v826_v57 }
 0x119   : > { %v1255_v62 = vadd.f32 %v2466_v40, %v954_v58  ;;  %v2214_v63 = vpop.f32.mrf.mxu0  ;;  %v2246_v0 = vpop.f32.mrf.mxu1  ;;  %v1289_v3 = vmax.f32 %v1225_v55, 0.0  ;;  %v1321_v4 = vmax.f32 %v1257_v56, 0.0 }
 0x11a   : > { %2111 = vst [vmem:[%s2481_s17 + $0x40] sm:$0xff] %v1987_v59   ;;  %2127 = vst [vmem:[%s2481_s17 + $0xc0] sm:$0xff] %v2067_v60   ;;  %v1226_v1 = vadd.f32 %v2214_v63, %v2466_v40  ;;  %v1258_v2 = vadd.f32 %v2246_v0, %v2466_v40  ;;  %v1287_v11 = vmax.f32 %v1223_v61, 0.0 }
 0x11b   : > { %v829_v5 = vpop.f32.mrf.mxu0  ;;  %v957_v6 = vpop.f32.mrf.mxu1  ;;  %v1319_v12 = vmax.f32 %v1255_v62, 0.0 }
 0x11c   : > { %v1290_v7 = vmax.f32 %v1226_v1, 0.0  ;;  %v1322_v8 = vmax.f32 %v1258_v2, 0.0  ;;  %v1224_v9 = vadd.f32 %v2466_v40, %v829_v5  ;;  %v1256_v10 = vadd.f32 %v2466_v40, %v957_v6 }
 0x11d   : > { %v2217_v13 = vpop.f32.mrf.mxu0  ;;  %v2249_v14 = vpop.f32.mrf.mxu1 }
 0x11e   : > { %v2002_v15 = vpack.c.bf16 %v1290_v7, %v1289_v3  ;;  %v2082_v16 = vpack.c.bf16 %v1322_v8, %v1321_v4  ;;  %v1288_v17 = vmax.f32 %v1224_v9, 0.0  ;;  %v1320_v18 = vmax.f32 %v1256_v10, 0.0 }
 0x11f   : > { %v1229_v19 = vadd.f32 %v2217_v13, %v2466_v40  ;;  %v1261_v20 = vadd.f32 %v2249_v14, %v2466_v40  ;;  %v842_v21 = vpop.f32.mrf.mxu0  ;;  %v970_v22 = vpop.f32.mrf.mxu1 }
 0x120   : > { %2114 = vst [vmem:[%s2481_s17 + $0x58] sm:$0xff] %v2002_v15   ;;  %2130 = vst [vmem:[%s2481_s17 + $0xd8] sm:$0xff] %v2082_v16   ;;  %v1997_v23 = vpack.c.bf16 %v1288_v17, %v1287_v11  ;;  %v2077_v24 = vpack.c.bf16 %v1320_v18, %v1319_v12  ;;  %v1227_v25 = vadd.f32 %v2466_v40, %v842_v21 }
 0x121   : > { %v1259_v26 = vadd.f32 %v2466_v40, %v970_v22  ;;  %v2218_v27 = vpop.f32.mrf.mxu0  ;;  %v2250_v28 = vpop.f32.mrf.mxu1  ;;  %v1293_v31 = vmax.f32 %v1229_v19, 0.0  ;;  %v1325_v32 = vmax.f32 %v1261_v20, 0.0 }
 0x122   : > { %2113 = vst [vmem:[%s2481_s17 + $0x50] sm:$0xff] %v1997_v23   ;;  %2129 = vst [vmem:[%s2481_s17 + $0xd0] sm:$0xff] %v2077_v24   ;;  %v1230_v29 = vadd.f32 %v2218_v27, %v2466_v40  ;;  %v1262_v30 = vadd.f32 %v2250_v28, %v2466_v40  ;;  %v1291_v39 = vmax.f32 %v1227_v25, 0.0 }
 0x123   : > { %v845_v33 = vpop.f32.mrf.mxu0  ;;  %v973_v34 = vpop.f32.mrf.mxu1  ;;  %v1323_v41 = vmax.f32 %v1259_v26, 0.0 }
 0x124   : > { %v1294_v35 = vmax.f32 %v1230_v29, 0.0  ;;  %v1326_v36 = vmax.f32 %v1262_v30, 0.0  ;;  %v1228_v37 = vadd.f32 %v2466_v40, %v845_v33  ;;  %v1260_v38 = vadd.f32 %v2466_v40, %v973_v34 }
 0x125   : > { %v2221_v42 = vpop.f32.mrf.mxu0  ;;  %v2253_v43 = vpop.f32.mrf.mxu1 }
 0x126   : > { %v2012_v44 = vpack.c.bf16 %v1294_v35, %v1293_v31  ;;  %v2092_v45 = vpack.c.bf16 %v1326_v36, %v1325_v32  ;;  %v1292_v46 = vmax.f32 %v1228_v37, 0.0  ;;  %v1324_v47 = vmax.f32 %v1260_v38, 0.0 }
 0x127   : > { %v1233_v48 = vadd.f32 %v2221_v42, %v2466_v40  ;;  %v1265_v49 = vadd.f32 %v2253_v43, %v2466_v40  ;;  %v858_v50 = vpop.f32.mrf.mxu0  ;;  %v986_v51 = vpop.f32.mrf.mxu1 }
 0x128   : > { %2116 = vst [vmem:[%s2481_s17 + $0x68] sm:$0xff] %v2012_v44   ;;  %2132 = vst [vmem:[%s2481_s17 + $0xe8] sm:$0xff] %v2092_v45   ;;  %v2007_v52 = vpack.c.bf16 %v1292_v46, %v1291_v39  ;;  %v2087_v53 = vpack.c.bf16 %v1324_v47, %v1323_v41  ;;  %v1231_v54 = vadd.f32 %v2466_v40, %v858_v50 }
 0x129   : > { %v1263_v55 = vadd.f32 %v2466_v40, %v986_v51  ;;  %v2222_v56 = vpop.f32.mrf.mxu0  ;;  %v2254_v57 = vpop.f32.mrf.mxu1  ;;  %v1297_v60 = vmax.f32 %v1233_v48, 0.0  ;;  %v1329_v61 = vmax.f32 %v1265_v49, 0.0 }
 0x12a   : > { %2115 = vst [vmem:[%s2481_s17 + $0x60] sm:$0xff] %v2007_v52   ;;  %2131 = vst [vmem:[%s2481_s17 + $0xe0] sm:$0xff] %v2087_v53   ;;  %v1234_v58 = vadd.f32 %v2222_v56, %v2466_v40  ;;  %v1266_v59 = vadd.f32 %v2254_v57, %v2466_v40  ;;  %v1295_v4 = vmax.f32 %v1231_v54, 0.0 }
 0x12b   : > { %v861_v62 = vpop.f32.mrf.mxu0  ;;  %v989_v63 = vpop.f32.mrf.mxu1  ;;  %v1327_v5 = vmax.f32 %v1263_v55, 0.0 }
 0x12c   : > { %v1298_v0 = vmax.f32 %v1234_v58, 0.0  ;;  %v1330_v1 = vmax.f32 %v1266_v59, 0.0  ;;  %v1232_v2 = vadd.f32 %v2466_v40, %v861_v62  ;;  %v1264_v3 = vadd.f32 %v2466_v40, %v989_v63 }
 0x12e   : > { %v2022_v6 = vpack.c.bf16 %v1298_v0, %v1297_v60  ;;  %v2102_v7 = vpack.c.bf16 %v1330_v1, %v1329_v61  ;;  %v1296_v8 = vmax.f32 %v1232_v2, 0.0  ;;  %v1328_v9 = vmax.f32 %v1264_v3, 0.0 }
 0x130   : > { %2118 = vst [vmem:[%s2481_s17 + $0x78] sm:$0xff] %v2022_v6   ;;  %2134 = vst [vmem:[%s2481_s17 + $0xf8] sm:$0xff] %v2102_v7   ;;  %v2017_v10 = vpack.c.bf16 %v1296_v8, %v1295_v4  ;;  %v2097_v11 = vpack.c.bf16 %v1328_v9, %v1327_v5 }
 0x132   : > { %2117 = vst [vmem:[%s2481_s17 + $0x70] sm:$0xff] %v2017_v10   ;;  %2133 = vst [vmem:[%s2481_s17 + $0xf0] sm:$0xff] %v2097_v11  }
 0x133 PF: > { %s13_s14 = sadd.s32 1, %s2357_s14   ;;  %s2584_s12 = smov %s2353_s13 }
 0x134   : > { %p10_p5 = scmp.ge.s32.totalorder %s13_s14, 4   ;;  %s2585_s13 = smov %s2587_s15 }
 0x136   :  { %12 = sbr.rel (!%p10_p5) target bundleno = 2 (0x2), region = 76 }

</bundles_post_ra>
